<compile_context>
chip_gen: v6e
topology: v6e:2x2x1
jax: 0.10.0
libtpu: 0.0.40
codegen_flags: <defaults>
</compile_context>

<pallas_src>
import functools

import jax
import jax.numpy as jnp
from jax.experimental import pallas as pl
from jax.experimental.pallas import tpu as pltpu

# Synthetic stand-ins for utils.MAX_STR_LENGTH * len(utils.CHARSET)
MAX_STR_LENGTH = 8
CHARSET_LEN = 32
IN_DIM = MAX_STR_LENGTH * CHARSET_LEN  # 256 (already a lane multiple)
H1 = 100
H2 = 15
OUT = 2

LANE = 128
SUBLANE = 8
H1P = 128      # padded hidden 1 (100 -> 128 lanes)
H2P = 128      # padded hidden 2 (15 -> 128 lanes, needed as MXU K dim)
OUT_PAD = 8    # padded output width: narrow, contiguous HBM writeback (wrapper slices to 2)

# Default batch tile.  Clamped to the (8-aligned) batch in the wrapper.
# TB=8192: double-buffered f32 x tiles = 16 MiB, output tiles ~0.5 MiB, weights ~0.25 MiB
# -> comfortably inside the explicit 32 MiB VMEM limit requested below (v7x has 64 MiB).
TB_DEFAULT = 8192
VMEM_LIMIT_BYTES = 32 * 1024 * 1024


def _mlp_kernel(x_ref, w1_ref, b1_ref, w2_ref, b2_ref, w3_ref, b3_ref, o_ref):
    x = x_ref[...]                                    # (TB, IN_DIM), f32 or bf16
    # Layer 1: Linear(IN_DIM, 128p) + ReLU   (MXU, f32 accumulate; bias/activation in f32)
    h1 = jnp.dot(x, w1_ref[...], preferred_element_type=jnp.float32) + b1_ref[...]
    h1 = jnp.maximum(h1, 0.0)
    # Layer 2: Linear(128p, 128p) + Sigmoid  (padded rows of w2 are zero, so the padded
    # ReLU columns contribute nothing; sigmoid(0)=0.5 in pad columns is harmless because
    # the corresponding w3 rows are zero.)
    h2 = jnp.dot(h1.astype(w2_ref.dtype), w2_ref[...],
                 preferred_element_type=jnp.float32) + b2_ref[...]
    h2 = jax.nn.sigmoid(h2)
    # Layer 3: Linear(128p, 8p)  -> narrow (TB, 8) store (only 2 real columns)
    yh = jnp.dot(h2.astype(w3_ref.dtype), w3_ref[...],
                 preferred_element_type=jnp.float32) + b3_ref[...]
    o_ref[...] = yh.astype(o_ref.dtype)


def _pad2(a, rows, cols):
    """Zero-pad a 2D array up to (rows, cols)."""
    return jnp.pad(a, ((0, rows - a.shape[0]), (0, cols - a.shape[1])))


def prepare_params(w1, b1, w2, b2, w3, b3, compute_dtype=jnp.float32):
    """Pad parameters to lane-dense shapes ONCE (hoisted out of the per-call wrapper).

    Weights are stored in `compute_dtype` (f32 or bf16); biases stay f32 so the bias add
    and activations run in f32 regardless of the matmul dtype.
    """
    w1p = _pad2(w1, IN_DIM, H1P).astype(compute_dtype)   # (256, 128)
    b1p = _pad2(b1, 1, H1P).astype(jnp.float32)          # (1, 128)
    w2p = _pad2(w2, H1P, H2P).astype(compute_dtype)      # (128, 128), rows >= H1 are zero
    b2p = _pad2(b2, 1, H2P).astype(jnp.float32)          # (1, 128)
    w3p = _pad2(w3, H2P, OUT_PAD).astype(compute_dtype)  # (128, 8),   rows >= H2 are zero
    b3p = _pad2(b3, 1, OUT_PAD).astype(jnp.float32)      # (1, 8)
    return (w1p, b1p, w2p, b2p, w3p, b3p)


@functools.partial(jax.jit, static_argnames=("tb",))
def name_classify_forward(x, padded_params, *, tb=TB_DEFAULT):
    """x: [B, IN_DIM] float32 -> [B, OUT] float32 (matches the PyTorch forward).

    `padded_params` must come from `prepare_params` (padding already done once).
    """
    w1p, b1p, w2p, b2p, w3p, b3p = padded_params
    B = x.shape[0]

    # --- pad batch to a multiple of the tile (and at least SUBLANE) ---
    b_aligned = max(SUBLANE, ((B + SUBLANE - 1) // SUBLANE) * SUBLANE)
    TB = min(tb, b_aligned)
    Bp = max(((B + TB - 1) // TB) * TB, TB)
    # x is the dominant HBM stream: cast it to the compute dtype (bf16 halves the read).
    xp = jnp.pad(x, ((0, Bp - B), (0, 0))).astype(w1p.dtype)

    grid = (pl.cdiv(Bp, TB),)

    const2d = lambda shape: pl.BlockSpec(shape, lambda i: (0, 0))  # resident weights/biases

    out_padded = pl.pallas_call(
        _mlp_kernel,
        out_shape=jax.ShapeDtypeStruct((Bp, OUT_PAD), jnp.float32),
        grid=grid,
        in_specs=[
            pl.BlockSpec((TB, IN_DIM), lambda i: (i, 0)),   # streamed x tile
            const2d(w1p.shape), const2d(b1p.shape),
            const2d(w2p.shape), const2d(b2p.shape),
            const2d(w3p.shape), const2d(b3p.shape),
        ],
        # Narrow, contiguous output block: only 32 B/row written back to HBM.
        out_specs=pl.BlockSpec((TB, OUT_PAD), lambda i: (i, 0)),
        compiler_params=pltpu.CompilerParams(
            dimension_semantics=("parallel",),
            vmem_limit_bytes=VMEM_LIMIT_BYTES,
        ),
    )(xp, w1p, b1p, w2p, b2p, w3p, b3p)

    return out_padded[:B, :OUT]


def init_params(key):
    """Deterministic parameter init (uniform, like PyTorch default Linear init)."""
    ks = jax.random.split(key, 6)

    def lin(k_w, k_b, fan_in, fan_out):
        bound = 1.0 / jnp.sqrt(fan_in)
        w = jax.random.uniform(k_w, (fan_in, fan_out), jnp.float32, -bound, bound)
        b = jax.random.uniform(k_b, (1, fan_out), jnp.float32, -bound, bound)
        return w, b

    w1, b1 = lin(ks[0], ks[1], IN_DIM, H1)
    w2, b2 = lin(ks[2], ks[3], H1, H2)
    w3, b3 = lin(ks[4], ks[5], H2, OUT)
    return w1, b1, w2, b2, w3, b3


def reference_forward(x, w1, b1, w2, b2, w3, b3):
    h1 = jnp.maximum(x @ w1 + b1, 0.0)
    h2 = jax.nn.sigmoid(h1 @ w2 + b2)
    return h2 @ w3 + b3


# TODO(synk): classify_name (string -> one-hot preprocessing + host-side argmax) is
# host logic, not a tensor op; it is intentionally not implemented as a kernel.

if __name__ == "__main__":
    key = jax.random.PRNGKey(0)
    k_x, k_p = jax.random.split(key)

    raw_params = init_params(k_p)
    params_f32 = prepare_params(*raw_params)  # padded once, outside the forward pass

    # Small shape consistent with the module (batch=2, features=256).
    batch = 2
    x = jax.random.normal(k_x, (batch, IN_DIM), jnp.float32)

    out = jax.block_until_ready(name_classify_forward(x, params_f32))
    ref = reference_forward(x, *raw_params)
    assert out.shape == (batch, OUT), out.shape
    assert jnp.allclose(out, ref, atol=1e-4, rtol=1e-4), float(jnp.max(jnp.abs(out - ref)))

    # Batch that is not tile-aligned, to exercise the padding path.
    batch2 = 37
    x2 = jax.random.normal(jax.random.PRNGKey(1), (batch2, IN_DIM), jnp.float32)
    out2 = jax.block_until_ready(name_classify_forward(x2, params_f32))
    ref2 = reference_forward(x2, *raw_params)
    assert out2.shape == (batch2, OUT), out2.shape
    assert jnp.allclose(out2, ref2, atol=1e-4, rtol=1e-4), float(jnp.max(jnp.abs(out2 - ref2)))

    # bf16 compute path (halves the dominant x HBM stream; loose tolerance for bf16 rounding).
    params_bf16 = prepare_params(*raw_params, compute_dtype=jnp.bfloat16)
    out_bf = jax.block_until_ready(name_classify_forward(x2, params_bf16))
    assert out_bf.shape == (batch2, OUT), out_bf.shape
    assert float(jnp.max(jnp.abs(out_bf - ref2))) < 5e-2, float(jnp.max(jnp.abs(out_bf - ref2)))

    print("KERNEL_OK")
</pallas_src>

<mosaic_0001>
module attributes {stable_mosaic.version = 11 : i64} {
  func.func @_mlp_kernel(%arg0: i32, %arg1: memref<8x256xf32, #tpu.memory_space<vmem>>, %arg2: memref<256x128xf32, #tpu.memory_space<vmem>>, %arg3: memref<1x128xf32, #tpu.memory_space<vmem>>, %arg4: memref<128x128xf32, #tpu.memory_space<vmem>>, %arg5: memref<1x128xf32, #tpu.memory_space<vmem>>, %arg6: memref<128x8xf32, #tpu.memory_space<vmem>>, %arg7: memref<1x8xf32, #tpu.memory_space<vmem>>, %arg8: memref<8x8xf32, #tpu.memory_space<vmem>>) attributes {dimension_semantics = [#tpu.dimension_semantics<parallel>], iteration_bounds = array<i64: 1>, scalar_prefetch = 0 : i64, scratch_operands = 0 : i64, tpu.core_type = #tpu.core_type<tc>, window_params = [{transform_indices = @transform_0, window_bounds = array<i64: 8, 256>}, {pipeline_mode = #tpu.pipeline_mode<synchronous>, transform_indices = @transform_1, window_bounds = array<i64: 256, 128>}, {pipeline_mode = #tpu.pipeline_mode<synchronous>, transform_indices = @transform_2, window_bounds = array<i64: 1, 128>}, {pipeline_mode = #tpu.pipeline_mode<synchronous>, transform_indices = @transform_3, window_bounds = array<i64: 128, 128>}, {pipeline_mode = #tpu.pipeline_mode<synchronous>, transform_indices = @transform_4, window_bounds = array<i64: 1, 128>}, {pipeline_mode = #tpu.pipeline_mode<synchronous>, transform_indices = @transform_5, window_bounds = array<i64: 128, 8>}, {pipeline_mode = #tpu.pipeline_mode<synchronous>, transform_indices = @transform_6, window_bounds = array<i64: 1, 8>}, {transform_indices = @transform_7, window_bounds = array<i64: 8, 8>}]} {
    %c0 = arith.constant 0 : index
    %c0_0 = arith.constant 0 : index
    %0 = vector.load %arg1[%c0, %c0_0] : memref<8x256xf32, #tpu.memory_space<vmem>>, vector<8x256xf32>
    %c0_1 = arith.constant 0 : index
    %c0_2 = arith.constant 0 : index
    %1 = vector.load %arg2[%c0_1, %c0_2] : memref<256x128xf32, #tpu.memory_space<vmem>>, vector<256x128xf32>
    %cst = arith.constant dense<0.000000e+00> : vector<8x128xf32>
    %2 = tpu.matmul %0, %1, %cst {dimension_numbers = #tpu.dot_dimension_numbers<[1], [0], [0], [1], [0, 0, 1, 1], [], []>} : vector<8x256xf32>, vector<256x128xf32>, vector<8x128xf32> -> vector<8x128xf32>
    %c0_3 = arith.constant 0 : index
    %c0_4 = arith.constant 0 : index
    %3 = vector.load %arg3[%c0_3, %c0_4] : memref<1x128xf32, #tpu.memory_space<vmem>>, vector<1x128xf32>
    %4 = vector.broadcast %3 : vector<1x128xf32> to vector<8x128xf32>
    %5 = arith.addf %2, %4 : vector<8x128xf32>
    %cst_5 = arith.constant 0.000000e+00 : f32
    %6 = vector.broadcast %cst_5 : f32 to vector<8x128xf32>
    %7 = arith.maximumf %5, %6 : vector<8x128xf32>
    %c0_6 = arith.constant 0 : index
    %c0_7 = arith.constant 0 : index
    %8 = vector.load %arg4[%c0_6, %c0_7] : memref<128x128xf32, #tpu.memory_space<vmem>>, vector<128x128xf32>
    %cst_8 = arith.constant dense<0.000000e+00> : vector<8x128xf32>
    %9 = tpu.matmul %7, %8, %cst_8 {dimension_numbers = #tpu.dot_dimension_numbers<[1], [0], [0], [1], [0, 0, 1, 1], [], []>} : vector<8x128xf32>, vector<128x128xf32>, vector<8x128xf32> -> vector<8x128xf32>
    %c0_9 = arith.constant 0 : index
    %c0_10 = arith.constant 0 : index
    %10 = vector.load %arg5[%c0_9, %c0_10] : memref<1x128xf32, #tpu.memory_space<vmem>>, vector<1x128xf32>
    %11 = vector.broadcast %10 : vector<1x128xf32> to vector<8x128xf32>
    %12 = arith.addf %9, %11 : vector<8x128xf32>
    %13 = arith.negf %12 : vector<8x128xf32>
    %14 = math.exp %13 : vector<8x128xf32>
    %cst_11 = arith.constant 1.000000e+00 : f32
    %15 = vector.broadcast %cst_11 : f32 to vector<8x128xf32>
    %16 = arith.addf %15, %14 : vector<8x128xf32>
    %17 = arith.divf %15, %16 : vector<8x128xf32>
    %c0_12 = arith.constant 0 : index
    %c0_13 = arith.constant 0 : index
    %18 = vector.load %arg6[%c0_12, %c0_13] : memref<128x8xf32, #tpu.memory_space<vmem>>, vector<128x8xf32>
    %cst_14 = arith.constant dense<0.000000e+00> : vector<8x8xf32>
    %19 = tpu.matmul %17, %18, %cst_14 {dimension_numbers = #tpu.dot_dimension_numbers<[1], [0], [0], [1], [0, 0, 1, 1], [], []>} : vector<8x128xf32>, vector<128x8xf32>, vector<8x8xf32> -> vector<8x8xf32>
    %c0_15 = arith.constant 0 : index
    %c0_16 = arith.constant 0 : index
    %20 = vector.load %arg7[%c0_15, %c0_16] : memref<1x8xf32, #tpu.memory_space<vmem>>, vector<1x8xf32>
    %21 = vector.broadcast %20 : vector<1x8xf32> to vector<8x8xf32>
    %22 = arith.addf %19, %21 : vector<8x8xf32>
    %c0_17 = arith.constant 0 : index
    %c0_18 = arith.constant 0 : index
    %23 = vector.load %arg8[%c0_17, %c0_18] : memref<8x8xf32, #tpu.memory_space<vmem>>, vector<8x8xf32>
    tpu.vector_store %arg8[%c0_17, %c0_18], %22 {strides = array<i32>} : memref<8x8xf32, #tpu.memory_space<vmem>>, vector<8x8xf32>,
    return
  }
  func.func @transform_0(%arg0: i32) -> (i32, i32) {
    %c0_i32 = arith.constant 0 : i32
    %c0_i32_0 = arith.constant 0 : i32
    return %arg0, %c0_i32 : i32, i32
  }
  func.func @transform_1(%arg0: i32) -> (i32, i32) {
    %c0_i32 = arith.constant 0 : i32
    %c0_i32_0 = arith.constant 0 : i32
    %c0_i32_1 = arith.constant 0 : i32
    return %c0_i32, %c0_i32_0 : i32, i32
  }
  func.func @transform_2(%arg0: i32) -> (i32, i32) {
    %c0_i32 = arith.constant 0 : i32
    %c0_i32_0 = arith.constant 0 : i32
    %c0_i32_1 = arith.constant 0 : i32
    return %c0_i32, %c0_i32_0 : i32, i32
  }
  func.func @transform_3(%arg0: i32) -> (i32, i32) {
    %c0_i32 = arith.constant 0 : i32
    %c0_i32_0 = arith.constant 0 : i32
    %c0_i32_1 = arith.constant 0 : i32
    return %c0_i32, %c0_i32_0 : i32, i32
  }
  func.func @transform_4(%arg0: i32) -> (i32, i32) {
    %c0_i32 = arith.constant 0 : i32
    %c0_i32_0 = arith.constant 0 : i32
    %c0_i32_1 = arith.constant 0 : i32
    return %c0_i32, %c0_i32_0 : i32, i32
  }
  func.func @transform_5(%arg0: i32) -> (i32, i32) {
    %c0_i32 = arith.constant 0 : i32
    %c0_i32_0 = arith.constant 0 : i32
    %c0_i32_1 = arith.constant 0 : i32
    return %c0_i32, %c0_i32_0 : i32, i32
  }
  func.func @transform_6(%arg0: i32) -> (i32, i32) {
    %c0_i32 = arith.constant 0 : i32
    %c0_i32_0 = arith.constant 0 : i32
    %c0_i32_1 = arith.constant 0 : i32
    return %c0_i32, %c0_i32_0 : i32, i32
  }
  func.func @transform_7(%arg0: i32) -> (i32, i32) {
    %c0_i32 = arith.constant 0 : i32
    %c0_i32_0 = arith.constant 0 : i32
    return %arg0, %c0_i32 : i32, i32
  }
}

</mosaic_0001>

<bundles_post_ra>
// kernel: name_classify_forward.1
= control target key start
LH: loop header
LB: loop body
LE: loop exit
PB: predicated region body
PF: predicated region fallthrough
CT: control target
= control target key end

     0   :  { %12 = vsyncpa [#allocation3], 0  ;;  %s525_s24 = smov [#allocation2]   ;;  %s721_s0 = inlined_call_operand.vmem [shape: f32[8,256], index: 0, kind: input, shape index: {}]   ;;  %s722_s1 = inlined_call_operand.hbm [shape: f32[256,128], index: 1, kind: input, shape index: {}]   ;;  %s723_s2 = inlined_call_operand.vmem [shape: f32[1,128], index: 2, kind: input, shape index: {}]   ;;  %s724_s3 = inlined_call_operand.vmem [shape: f32[128,128], index: 3, kind: input, shape index: {}]   ;;  %s725_s4 = inlined_call_operand.vmem [shape: f32[1,128], index: 4, kind: input, shape index: {}]   ;;  %s726_s5 = inlined_call_operand.vmem [shape: f32[128,8], index: 5, kind: input, shape index: {}]   ;;  %s727_s6 = inlined_call_operand.vmem [shape: f32[1,8], index: 6, kind: input, shape index: {}]   ;;  %s728_s7 = inlined_call_operand.vmem [shape: f32[8,8], index: 7, kind: output, shape index: {}]  }
   0x1   :  { %s20_s25 = sshll.u32 %s525_s24, 4  ;;  %s21_s25 = int_to_ptr.vmem [resolvable:$true] %s20_s25 }
   0x2   :  { %s511_s26 = scalar_lea.vmem %s21_s25, 4096  ;;  %p516_p1 = scmp.lt.s32.totalorder %s21_s25, %s21_s25 }
   0x3   :  { %p512_p0 = scmp.ne.s32.totalorder %s21_s25, %s511_s26  ;;  %p517_p2 = scmp.lt.s32.totalorder %s511_s26, %s511_s26 }
   0x5   :  { %p518_p3 = por %p517_p2, %p516_p1 }
   0x7   :  { %p519_p4 = pnand %p518_p3, %p512_p0 }
   0x9   :  { %522 = shalt.err (!%p519_p4)
}
   0xa   :  { %s526_s27 = smov 128   ;;  %s527_s28 = smov 8  }
   0xb   :  { %26 = dma.hbm_to_vmem [thread:$0]  %s722_s1, 4096, %s21_s25, [#allocation3], %s526_s27, %s526_s27, %s527_s28  }
   0xc   :  { %523 = dma.done.wait [#allocation3], 4096  }
   0xd   :  { %524 = vsyncadd [#allocation3], 4294963200  ;;  %v528_v0 = vmov 0.0   ;;  %v73_v1 = vld [vmem:[#allocation2 + $0xf8] sm:$0xff]  ;;  %v72_v3 = vld [vmem:[#allocation2 + $0xf0] sm:$0xff]  ;;  %vm529_vm0 = vmmov 0  }
   0xe   :  { %424 = vmatprep.subr.mxu1 %v528_v0  ;;  %v57_v2 = vld [vmem:[#allocation2 + $0x78] sm:$0xff]  ;;  %355 = vmatprep.subr.mxu0 %v73_v1  ;;  %v56_v4 = vld [vmem:[#allocation2 + $0x70] sm:$0xff]  ;;  %v71_v5 = vld [vmem:[#allocation2 + $0xe8] sm:$0xff]  ;;  %vm344_vm1 = vcmask 64512  }
   0xf   :  { %356 = vmatpush3.msra.mxu0 %v57_v2  ;;  %v55_v6 = vld [vmem:[#allocation2 + $0x68] sm:$0xff]  ;;  %v70_v7 = vld [vmem:[#allocation2 + $0xe0] sm:$0xff]  ;;  %v69_v9 = vld [vmem:[#allocation2 + $0xd8] sm:$0xff]  ;;  %456 = vmatprep.mubr.msk.f32.mxu1 %vm529_vm0, %v528_v0 }
  0x10   :  { %357 = vmatprep.subr.mxu0 %v72_v3  ;;  %v54_v8 = vld [vmem:[#allocation2 + $0x60] sm:$0xff]  ;;  %v53_v10 = vld [vmem:[#allocation2 + $0x58] sm:$0xff]  ;;  %v68_v11 = vld [vmem:[#allocation2 + $0xd0] sm:$0xff] }
  0x11   :  { %358 = vmatpush3.msra.mxu0 %v56_v4  ;;  %v52_v12 = vld [vmem:[#allocation2 + $0x50] sm:$0xff]  ;;  %v67_v13 = vld [vmem:[#allocation2 + $0xc8] sm:$0xff]  ;;  %v167_v16 = vld [vmem:[%s724_s3 + $0x78] sm:$0xff] }
  0x12   :  { %359 = vmatprep.subr.mxu0 %v71_v5  ;;  %v41_v14 = vld [vmem:[%s721_s0 + $0x8] sm:$0xff]  ;;  %v166_v17 = vld [vmem:[%s724_s3 + $0x70] sm:$0xff]  ;;  %v66_v18 = vld [vmem:[#allocation2 + $0xc0] sm:$0xff]  ;;  %425 = vmatpush3.msra.mxu1 %v167_v16 }
  0x13   :  { %360 = vmatpush3.msra.mxu0 %v55_v6  ;;  %v51_v15 = vld [vmem:[#allocation2 + $0x48] sm:$0xff]  ;;  %145 = vmatprep.mubr.f32.mxu0 %v41_v14  ;;  %v50_v19 = vld [vmem:[#allocation2 + $0x40] sm:$0xff]  ;;  %v65_v21 = vld [vmem:[#allocation2 + $0xb8] sm:$0xff] }
  0x14   :  { %361 = vmatprep.subr.mxu0 %v70_v7  ;;  %426 = vmatprep.subr.mxu1 %v528_v0  ;;  %v165_v20 = vld [vmem:[%s724_s3 + $0x68] sm:$0xff]  ;;  %v49_v22 = vld [vmem:[#allocation2 + $0x38] sm:$0xff]  ;;  %v164_v23 = vld [vmem:[%s724_s3 + $0x60] sm:$0xff] }
  0x15   :  { %362 = vmatpush3.msra.mxu0 %v54_v8  ;;  %427 = vmatpush3.msra.mxu1 %v166_v17  ;;  %v64_v24 = vld [vmem:[#allocation2 + $0xb0] sm:$0xff]  ;;  %v163_v26 = vld [vmem:[%s724_s3 + $0x58] sm:$0xff]  ;;  %v63_v27 = vld [vmem:[#allocation2 + $0xa8] sm:$0xff] }
  0x16   :  { %363 = vmatprep.subr.mxu0 %v69_v9  ;;  %428 = vmatprep.subr.mxu1 %v528_v0  ;;  %v48_v25 = vld [vmem:[#allocation2 + $0x30] sm:$0xff]  ;;  %v47_v28 = vld [vmem:[#allocation2 + $0x28] sm:$0xff]  ;;  %v62_v30 = vld [vmem:[#allocation2 + $0xa0] sm:$0xff] }
  0x17   :  { %364 = vmatpush3.msra.mxu0 %v53_v10  ;;  %429 = vmatpush3.msra.mxu1 %v165_v20  ;;  %v162_v29 = vld [vmem:[%s724_s3 + $0x50] sm:$0xff]  ;;  %v46_v31 = vld [vmem:[#allocation2 + $0x20] sm:$0xff]  ;;  %v161_v32 = vld [vmem:[%s724_s3 + $0x48] sm:$0xff] }
  0x18   :  { %365 = vmatprep.subr.mxu0 %v68_v11  ;;  %430 = vmatprep.subr.mxu1 %v528_v0  ;;  %v61_v33 = vld [vmem:[#allocation2 + $0x98] sm:$0xff]  ;;  %v160_v35 = vld [vmem:[%s724_s3 + $0x40] sm:$0xff]  ;;  %v60_v36 = vld [vmem:[#allocation2 + $0x90] sm:$0xff] }
  0x19   :  { %366 = vmatpush3.msra.mxu0 %v52_v12  ;;  %431 = vmatpush3.msra.mxu1 %v164_v23  ;;  %v45_v34 = vld [vmem:[#allocation2 + $0x18] sm:$0xff]  ;;  %v44_v37 = vld [vmem:[#allocation2 + $0x10] sm:$0xff]  ;;  %v59_v39 = vld [vmem:[#allocation2 + $0x88] sm:$0xff] }
  0x1a   :  { %367 = vmatprep.subr.mxu0 %v67_v13  ;;  %432 = vmatprep.subr.mxu1 %v528_v0  ;;  %v159_v38 = vld [vmem:[%s724_s3 + $0x38] sm:$0xff]  ;;  %v43_v40 = vld [vmem:[#allocation2 + $0x8] sm:$0xff]  ;;  %v158_v41 = vld [vmem:[%s724_s3 + $0x30] sm:$0xff] }
  0x1b   :  { %368 = vmatpush3.msra.mxu0 %v51_v15  ;;  %433 = vmatpush3.msra.mxu1 %v163_v26  ;;  %v58_v42 = vld [vmem:[#allocation2 + $0x80] sm:$0xff]  ;;  %v157_v44 = vld [vmem:[%s724_s3 + $0x28] sm:$0xff]  ;;  %v155_v47 = vld [vmem:[%s724_s3 + $0x18] sm:$0xff] }
  0x1c   :  { %369 = vmatprep.subr.mxu0 %v66_v18  ;;  %434 = vmatprep.subr.mxu1 %v528_v0  ;;  %v42_v43 = vld [vmem:[#allocation2] sm:$0xff]  ;;  %v154_v48 = vld [vmem:[%s724_s3 + $0x10] sm:$0xff]  ;;  %v153_v49 = vld [vmem:[%s724_s3 + $0x8] sm:$0xff] }
  0x1d   :  { %370 = vmatpush3.msra.mxu0 %v50_v19  ;;  %435 = vmatpush3.msra.mxu1 %v162_v29  ;;  %v40_v45 = vld [vmem:[%s721_s0] sm:$0xff]  ;;  %v266_v57 = vld [vmem:[%s726_s5 + $0x78] sm:$0xff]  ;;  %v265_v58 = vld [vmem:[%s726_s5 + $0x70] sm:$0xff] }
  0x1e   :  { %371 = vmatprep.subr.mxu0 %v65_v21  ;;  %436 = vmatprep.subr.mxu1 %v528_v0  ;;  %v156_v46 = vld [vmem:[%s724_s3 + $0x20] sm:$0xff]  ;;  %v264_v59 = vld [vmem:[%s726_s5 + $0x68] sm:$0xff]  ;;  %v262_v61 = vld [vmem:[%s726_s5 + $0x58] sm:$0xff] }
  0x1f   :  { %372 = vmatpush3.msra.mxu0 %v49_v22  ;;  %437 = vmatpush3.msra.mxu1 %v161_v32  ;;  %v152_v50 = vld [vmem:[%s724_s3] sm:$0xff]  ;;  %v261_v62 = vld [vmem:[%s726_s5 + $0x50] sm:$0xff]  ;;  %v260_v63 = vld [vmem:[%s726_s5 + $0x48] sm:$0xff] }
  0x20   :  { %373 = vmatprep.subr.mxu0 %v64_v24  ;;  %438 = vmatprep.subr.mxu1 %v528_v0  ;;  %v351_v52 = vld [vmem:[%s723_s2] ss:$0 sm:$0xff]  ;;  %v258_v2 = vld [vmem:[%s726_s5 + $0x38] sm:$0xff]  ;;  %v257_v3 = vld [vmem:[%s726_s5 + $0x30] sm:$0xff] }
  0x21   :  { %374 = vmatpush3.msra.mxu0 %v48_v25  ;;  %439 = vmatpush3.msra.mxu1 %v160_v35  ;;  %v263_v60 = vld [vmem:[%s726_s5 + $0x60] sm:$0xff]  ;;  %v256_v4 = vld [vmem:[%s726_s5 + $0x28] sm:$0xff]  ;;  %v254_v6 = vld [vmem:[%s726_s5 + $0x18] sm:$0xff] }
  0x22   :  { %375 = vmatprep.subr.mxu0 %v63_v27  ;;  %440 = vmatprep.subr.mxu1 %v528_v0  ;;  %v259_v1 = vld [vmem:[%s726_s5 + $0x40] sm:$0xff]  ;;  %v253_v7 = vld [vmem:[%s726_s5 + $0x10] sm:$0xff]  ;;  %v252_v8 = vld [vmem:[%s726_s5 + $0x8] sm:$0xff] }
  0x23   :  { %376 = vmatpush3.msra.mxu0 %v47_v28  ;;  %441 = vmatpush3.msra.mxu1 %v159_v38  ;;  %v255_v5 = vld [vmem:[%s726_s5 + $0x20] sm:$0xff] }
  0x24   :  { %377 = vmatprep.subr.mxu0 %v62_v30  ;;  %442 = vmatprep.subr.mxu1 %v528_v0  ;;  %v251_v9 = vld [vmem:[%s726_s5] sm:$0xff] }
  0x25   :  { %378 = vmatpush3.msra.mxu0 %v46_v31  ;;  %443 = vmatpush3.msra.mxu1 %v158_v41  ;;  %v352_v10 = vld [vmem:[%s725_s4] ss:$0 sm:$0xff] }
  0x26   :  { %379 = vmatprep.subr.mxu0 %v61_v33  ;;  %444 = vmatprep.subr.mxu1 %v528_v0  ;;  %v354_v18 = vld [vmem:[%s727_s6] ss:$0 sm:$0xff] }
  0x27   :  { %380 = vmatpush3.msra.mxu0 %v45_v34  ;;  %445 = vmatpush3.msra.mxu1 %v157_v44 }
  0x28   :  { %381 = vmatprep.subr.mxu0 %v60_v36  ;;  %446 = vmatprep.subr.mxu1 %v528_v0 }
  0x29   :  { %382 = vmatpush3.msra.mxu0 %v44_v37  ;;  %447 = vmatpush3.msra.mxu1 %v156_v46 }
  0x2a   :  { %383 = vmatprep.subr.mxu0 %v59_v39  ;;  %448 = vmatprep.subr.mxu1 %v528_v0 }
  0x2b   :  { %384 = vmatpush3.msra.mxu0 %v43_v40  ;;  %449 = vmatpush3.msra.mxu1 %v155_v47 }
  0x2c   :  { %385 = vmatprep.subr.mxu0 %v58_v42  ;;  %450 = vmatprep.subr.mxu1 %v528_v0 }
  0x2d   :  { %386 = vmatpush3.msra.mxu0 %v42_v43  ;;  %451 = vmatpush3.msra.mxu1 %v154_v48 }
  0x2e   :  { %146 = vmatmul.mubr.f32.vlgmr.msra.gmra.mxu0 %v40_v45  ;;  %459 = vmatprep.subr.mxu0 %v528_v0 }
  0x2f   :  { %452 = vmatprep.subr.mxu1 %v528_v0  ;;  %491 = vmatprep.mubr.msk.f32.mxu0 %vm529_vm0, %v528_v0 }
  0x30   :  { %453 = vmatpush3.msra.mxu1 %v153_v49  ;;  %460 = vmatpush3.msra.mxu0 %v266_v57 }
  0x31   :  { %454 = vmatprep.subr.mxu1 %v528_v0  ;;  %461 = vmatprep.subr.mxu0 %v528_v0 }
  0x32   :  { %455 = vmatpush3.msra.mxu1 %v152_v50  ;;  %462 = vmatpush3.msra.mxu0 %v265_v58 }
  0x33   :  { %463 = vmatprep.subr.mxu0 %v528_v0 }
  0x34   :  { %464 = vmatpush3.msra.mxu0 %v264_v59 }
  0x35   :  { %465 = vmatprep.subr.mxu0 %v528_v0 }
  0x36   :  { %466 = vmatpush3.msra.mxu0 %v263_v60 }
  0x37   :  { %467 = vmatprep.subr.mxu0 %v528_v0 }
  0x38   :  { %468 = vmatpush3.msra.mxu0 %v262_v61 }
  0x39   :  { %469 = vmatprep.subr.mxu0 %v528_v0 }
  0x3a   :  { %470 = vmatpush3.msra.mxu0 %v261_v62 }
  0x3b   :  { %471 = vmatprep.subr.mxu0 %v528_v0 }
  0x3c   :  { %472 = vmatpush3.msra.mxu0 %v260_v63 }
  0x3d   :  { %473 = vmatprep.subr.mxu0 %v528_v0 }
  0x3e   :  { %474 = vmatpush3.msra.mxu0 %v259_v1 }
  0x3f   :  { %475 = vmatprep.subr.mxu0 %v528_v0 }
  0x40   :  { %476 = vmatpush3.msra.mxu0 %v258_v2 }
  0x41   :  { %477 = vmatprep.subr.mxu0 %v528_v0 }
  0x42   :  { %478 = vmatpush3.msra.mxu0 %v257_v3 }
  0x43   :  { %479 = vmatprep.subr.mxu0 %v528_v0 }
  0x44   :  { %480 = vmatpush3.msra.mxu0 %v256_v4 }
  0x45   :  { %481 = vmatprep.subr.mxu0 %v528_v0 }
  0x46   :  { %482 = vmatpush3.msra.mxu0 %v255_v5 }
  0x47   :  { %483 = vmatprep.subr.mxu0 %v528_v0 }
  0x48   :  { %484 = vmatpush3.msra.mxu0 %v254_v6 }
  0x49   :  { %485 = vmatprep.subr.mxu0 %v528_v0 }
  0x4a   :  { %486 = vmatpush3.msra.mxu0 %v253_v7 }
  0x4b   :  { %487 = vmatprep.subr.mxu0 %v528_v0 }
  0x4c   :  { %488 = vmatpush3.msra.mxu0 %v252_v8 }
  0x4d   :  { %489 = vmatprep.subr.mxu0 %v528_v0 }
  0x4e   :  { %490 = vmatpush3.msra.mxu0 %v251_v9 }
  0xee   :  { %v387_v51 = vpop.f32.mrf.mxu0 }
  0xf0   :  { %v388_v53 = vpop.f32.mrf.mxu0 }
  0xf1   :  { %v389_v54 = vadd.f32 %v388_v53, %v387_v51 }
  0xf3   :  { %v148_v55 = vadd.f32 %v389_v54, %v351_v52 }
  0xf5   :  { %v151_v56 = vmax.f32 %v148_v55, 0.0 }
  0xf7   :  { %457 = vmatmul.mubr.f32.vlgmr.msra.gmra.mxu1 %v151_v56 }
 0x1b7   :  { %v241_v11 = vpop.f32.mrf.mxu1 }
 0x1b8   :  { %v242_v12 = vadd.f32 %v352_v10, %v241_v11 }
 0x1b9   :  { %v458_v13 = vpop.f32.mrf.mxu1 }
 0x1ba   :  { %v353_v14 = vmul.f32 -1.442695, %v242_v12 }
 0x1bc   :  { %499 = vpow2.f32 %v353_v14 }
 0x1c9   :  { %v500_v15 = vpop.eup %499 }
 0x1ca   :  { %v248_v16 = vadd.f32 1.0, %v500_v15 }
 0x1cc   :  { %501 = vrcp.f32 %v248_v16 }
 0x1d9   :  { %v502_v17 = vpop.eup %501 }
 0x1da   :  { %492 = vmatmul.mubr.f32.vlgmr.msra.gmra.mxu0 %v502_v17 }
 0x29a   :  { %v340_v0 = vpop.f32.mrf.mxu0 }
 0x29b   :  { %v341_v19 = vadd.f32 %v354_v18, %v340_v0 }
 0x29c   :  { %v493_v20 = vpop.f32.mrf.mxu0 }
 0x29d   :  { %345 = vst.msk [vmem:[%s728_s7] sm:$0xff] %vm344_vm1, %v341_v19 }
 0x29e   :  { %350 = vsyncpa [#allocation3], 1 }

</bundles_post_ra>
